<compile_context>
chip_gen: v6e
topology: v6e:2x2x1
jax: 0.10.0
libtpu: 0.0.40
codegen_flags: <defaults>
</compile_context>

<pallas_src>
import numpy as np
import jax
import jax.numpy as jnp
from jax.experimental import pallas as pl
from jax.experimental.pallas import tpu as pltpu


def build_pe(d_model: int, max_len: int = 5000) -> jnp.ndarray:
    """Positional-encoding buffer, identical to the PyTorch __init__.

    Returns pe of shape (max_len, 1, d_model), matching the registered buffer
    (pe.unsqueeze(0).transpose(0, 1) in the PyTorch module).
    """
    position = np.arange(0, max_len, dtype=np.float32)[:, None]
    div_term = np.exp(
        np.arange(0, d_model, 2, dtype=np.float32) * (-np.log(10000.0) / d_model))
    pe = np.zeros((max_len, d_model), dtype=np.float32)
    pe[:, 0::2] = np.sin(position * div_term)
    if d_model % 2 == 1:
        pe[:, 1::2] = np.cos(position * div_term[:-1])
    else:
        pe[:, 1::2] = np.cos(position * div_term)
    return jnp.asarray(pe)[:, None, :]                       # (max_len, 1, d_model)


def _add_pe_kernel(x_ref, pe_ref, o_ref):
    # Pure VPU elementwise add.  In the 3-D path pe (ts,1,D) sublane-broadcasts over
    # the batch axis of x (ts,tb,D); in the collapsed 2-D path the shapes match.
    o_ref[...] = (x_ref[...] + pe_ref[...]).astype(o_ref.dtype)


def _sublane_multiple(itemsize: int) -> int:
    # Packed-sublane multiple per dtype width: 8 (f32) / 16 (bf16) / 32 (int8/fp8).
    return max(8, 32 // itemsize)


def _vmem_capacity_bytes() -> int:
    try:
        return int(pltpu.get_tpu_info().vmem_capacity_bytes)
    except Exception:
        return 64 << 20   # conservative fallback: v7x per-TensorCore VMEM


class AbsolutePositionEncodingPallas:
    """Pallas TPU implementation of the PyTorch AbsolutePositionEncoding forward."""

    def __init__(self, d_model: int, max_len: int = 5000):
        self.d_model = int(d_model)
        self.max_len = int(max_len)
        self.pe = build_pe(self.d_model, self.max_len)        # (max_len, 1, D) f32
        self._pe_cache = {}                                    # hoisted pe prep

    # ---- pe preparation (hoisted out of the per-call hot path, cached) ----------
    def _prepared_pe(self, S, B, dtype, collapsed):
        key = (S, B, jnp.dtype(dtype).name, bool(collapsed))
        buf = self._pe_cache.get(key)
        if buf is None:
            pe_s = self.pe[:S].astype(dtype)                            # (S, 1, D)
            if collapsed:
                buf = jnp.broadcast_to(
                    pe_s, (S, B, self.d_model)).reshape(S, B * self.d_model)
            else:
                buf = pe_s
            buf = jax.block_until_ready(buf)
            self._pe_cache[key] = buf
        return buf

    # ---- forward -----------------------------------------------------------------
    def __call__(self, x, *, tile_bytes_target=None, donate_x=False):
        S, B, D = x.shape
        assert D == self.d_model, f"d_model mismatch: {D} vs {self.d_model}"
        assert S <= self.max_len, f"sequence length {S} exceeds max_len {self.max_len}"

        itemsize = jnp.dtype(x.dtype).itemsize
        sub = _sublane_multiple(itemsize)
        vmem_cap = _vmem_capacity_bytes()

        # Tile budget: ~8 MiB by default, always derived from (and fitting) this
        # part's per-core VMEM (64 MiB on v7x, 128 MiB on v5e/v6e).
        max_target = max(1 << 20, (vmem_cap - (16 << 20)) // 6)
        tile_target = min(tile_bytes_target or (8 << 20), max_target)

        # Force >= 4 seq blocks (v7x 2-TC sharding + pipeline overlap) only when the
        # problem is big enough that the ~0.35us per-step overhead is amortized.
        total_bytes = S * B * D * itemsize
        min_seq_blocks = 4 if total_bytes >= (1 << 20) else 1

        collapsed = (D % 128 != 0) or (B < sub)

        if not collapsed:
            # ---- 3-D path: (ts, tb, D) blocks, lanes dense, pe stays (ts, 1, D) ----
            row_bytes = B * D * itemsize
            if row_bytes <= tile_target:
                tb = B
                ts = max(1, min(S, tile_target // row_bytes))
                ts = min(ts, max(1, pl.cdiv(S, min_seq_blocks)))
            else:
                # A single seq row exceeds the budget: tile batch too, preferring a
                # sublane-packed divisor of B (no masked remainder blocks).
                ts = 1
                cap = max(sub, tile_target // (D * itemsize))
                tb = 0
                for cand in range(min(B, cap), sub - 1, -1):
                    if B % cand == 0 and cand % sub == 0:
                        tb = cand
                        break
                if tb == 0:
                    tb = min(B, max(sub, (cap // sub) * sub))

            pe_buf = self._prepared_pe(S, B, x.dtype, collapsed=False)   # (S, 1, D)
            x_in = x
            out_shape = jax.ShapeDtypeStruct((S, B, D), x.dtype)

            if tb == B:
                # Common case: 1-D grid over seq only (no dead batch axis).
                grid = (pl.cdiv(S, ts),)
                in_specs = [pl.BlockSpec((ts, B, D), lambda i: (i, 0, 0)),
                            pl.BlockSpec((ts, 1, D), lambda i: (i, 0, 0))]
                out_spec = pl.BlockSpec((ts, B, D), lambda i: (i, 0, 0))
                dims = ("parallel",)
            else:
                grid = (pl.cdiv(S, ts), pl.cdiv(B, tb))
                in_specs = [pl.BlockSpec((ts, tb, D), lambda i, j: (i, j, 0)),
                            # batch-invariant: the pe tile stays resident across j.
                            pl.BlockSpec((ts, 1, D), lambda i, j: (i, 0, 0))]
                out_spec = pl.BlockSpec((ts, tb, D), lambda i, j: (i, j, 0))
                dims = ("parallel", "parallel")

            x_tile_bytes = ts * tb * D * itemsize
            pe_tile_bytes = ts * D * itemsize
            bytes_accessed = (2 * S * B * D + S * D) * itemsize
        else:
            # ---- collapsed 2-D path: (S, B*D), lane-dense output, packed sublanes --
            BD = B * D
            row_bytes = BD * itemsize
            ts = max(1, min(S, tile_target // max(1, row_bytes)))
            ts = min(ts, max(1, pl.cdiv(S, min_seq_blocks)))
            if ts < S:
                ts = min(S, max(sub, (ts // sub) * sub))   # keep sublanes packed

            pe_buf = self._prepared_pe(S, B, x.dtype, collapsed=True)     # (S, B*D)
            x_in = x.reshape(S, BD)          # free: trailing-dim merge, no transpose
            out_shape = jax.ShapeDtypeStruct((S, BD), x.dtype)

            grid = (pl.cdiv(S, ts),)
            in_specs = [pl.BlockSpec((ts, BD), lambda i: (i, 0)),
                        pl.BlockSpec((ts, BD), lambda i: (i, 0))]
            out_spec = pl.BlockSpec((ts, BD), lambda i: (i, 0))
            dims = ("parallel",)

            x_tile_bytes = ts * BD * itemsize
            pe_tile_bytes = ts * BD * itemsize
            bytes_accessed = 3 * S * B * D * itemsize

        # VMEM budget from the actual tile plan: double-buffered x/out + pe + slack.
        vmem_limit = 2 * (2 * x_tile_bytes + pe_tile_bytes) + (2 << 20)
        vmem_limit = int(min(max(vmem_limit, 4 << 20), vmem_cap))

        out = pl.pallas_call(
            _add_pe_kernel,
            out_shape=out_shape,
            grid=grid,
            in_specs=in_specs,
            out_specs=out_spec,
            compiler_params=pltpu.CompilerParams(
                dimension_semantics=dims,
                vmem_limit_bytes=vmem_limit),
            cost_estimate=pl.CostEstimate(
                flops=S * B * D, transcendentals=0,
                bytes_accessed=int(bytes_accessed)),
            input_output_aliases=({0: 0} if donate_x else {}),
        )(x_in, pe_buf)

        return out.reshape(S, B, D) if collapsed else out


if __name__ == "__main__":
    # 1) Shapes implied by the PyTorch forward: x is (seq, batch, d_model).
    #    Small d_model / batch -> exercises the collapsed lane-dense path.
    d_model, max_len = 32, 5000
    S, B = 8, 2
    mod = AbsolutePositionEncodingPallas(d_model, max_len)
    x = jax.random.normal(jax.random.PRNGKey(0), (S, B, d_model), dtype=jnp.float32)
    out = jax.block_until_ready(mod(x))
    ref = x + mod.pe[:S].astype(x.dtype)
    np.testing.assert_allclose(np.asarray(out), np.asarray(ref), rtol=1e-6, atol=1e-6)

    # 2) Lane-dense 3-D path with a multi-block, pipelined 1-D seq grid
    #    (small tile budget forces tiling; pe index_map is batch-invariant).
    S2, B2, D2 = 128, 8, 128
    mod2 = AbsolutePositionEncodingPallas(D2, 512)
    x2 = jax.random.normal(jax.random.PRNGKey(1), (S2, B2, D2), dtype=jnp.float32)
    out2 = jax.block_until_ready(mod2(x2, tile_bytes_target=64 << 10))
    ref2 = x2 + mod2.pe[:S2]
    np.testing.assert_allclose(np.asarray(out2), np.asarray(ref2), rtol=1e-6, atol=1e-6)

    # 3) Collapsed path with seq tiling, bf16 (dtype-aware sublane multiple = 16).
    S3, B3, D3 = 64, 2, 48
    mod3 = AbsolutePositionEncodingPallas(D3, 256)
    x3 = jax.random.normal(jax.random.PRNGKey(2), (S3, B3, D3), dtype=jnp.bfloat16)
    out3 = jax.block_until_ready(mod3(x3, tile_bytes_target=8 << 10))
    ref3 = x3 + mod3.pe[:S3].astype(jnp.bfloat16)
    np.testing.assert_allclose(np.asarray(out3.astype(jnp.float32)),
                               np.asarray(ref3.astype(jnp.float32)),
                               rtol=1e-2, atol=1e-2)

    print("KERNEL_OK")
</pallas_src>

<mosaic_0001>
module attributes {stable_mosaic.version = 11 : i64} {
  func.func @_add_pe_kernel(%arg0: i32, %arg1: memref<8x64xf32, #tpu.memory_space<vmem>>, %arg2: memref<8x64xf32, #tpu.memory_space<vmem>>, %arg3: memref<8x64xf32, #tpu.memory_space<vmem>>) attributes {dimension_semantics = [#tpu.dimension_semantics<parallel>], iteration_bounds = array<i64: 1>, scalar_prefetch = 0 : i64, scratch_operands = 0 : i64, tpu.core_type = #tpu.core_type<tc>, window_params = [{transform_indices = @transform_0, window_bounds = array<i64: 8, 64>}, {transform_indices = @transform_1, window_bounds = array<i64: 8, 64>}, {transform_indices = @transform_2, window_bounds = array<i64: 8, 64>}]} {
    %c0 = arith.constant 0 : index
    %c0_0 = arith.constant 0 : index
    %0 = vector.load %arg1[%c0, %c0_0] : memref<8x64xf32, #tpu.memory_space<vmem>>, vector<8x64xf32>
    %c0_1 = arith.constant 0 : index
    %c0_2 = arith.constant 0 : index
    %1 = vector.load %arg2[%c0_1, %c0_2] : memref<8x64xf32, #tpu.memory_space<vmem>>, vector<8x64xf32>
    %2 = arith.addf %0, %1 : vector<8x64xf32>
    %c0_3 = arith.constant 0 : index
    %c0_4 = arith.constant 0 : index
    %3 = vector.load %arg3[%c0_3, %c0_4] : memref<8x64xf32, #tpu.memory_space<vmem>>, vector<8x64xf32>
    tpu.vector_store %arg3[%c0_3, %c0_4], %2 {strides = array<i32>} : memref<8x64xf32, #tpu.memory_space<vmem>>, vector<8x64xf32>,
    return
  }
  func.func @transform_0(%arg0: i32) -> (i32, i32) {
    %c0_i32 = arith.constant 0 : i32
    %c0_i32_0 = arith.constant 0 : i32
    return %arg0, %c0_i32 : i32, i32
  }
  func.func @transform_1(%arg0: i32) -> (i32, i32) {
    %c0_i32 = arith.constant 0 : i32
    %c0_i32_0 = arith.constant 0 : i32
    return %arg0, %c0_i32 : i32, i32
  }
  func.func @transform_2(%arg0: i32) -> (i32, i32) {
    %c0_i32 = arith.constant 0 : i32
    %c0_i32_0 = arith.constant 0 : i32
    return %arg0, %c0_i32 : i32, i32
  }
}

</mosaic_0001>

<bundles_post_ra>
// kernel: tpu_custom_call.1
= control target key start
LH: loop header
LB: loop body
LE: loop exit
PB: predicated region body
PF: predicated region fallthrough
CT: control target
= control target key end

     0   :  { %7 = vsyncpa [#allocation3], 0  ;;  %s153_s0 = inlined_call_operand.hbm [shape: f32[8,64], index: 0, kind: input, shape index: {}]   ;;  %s154_s1 = inlined_call_operand.hbm [shape: f32[8,64], index: 1, kind: input, shape index: {}]   ;;  %s155_s2 = inlined_call_operand.hbm [shape: f32[8,64], index: 2, kind: output, shape index: {}]  }
   0x1   :  { %8 = vsyncpa [#allocation6], 0 }
   0x2   :  { %9 = vsyncpa [#allocation4], 0  ;;  %s126_s9 = smov [#allocation2]   ;;  %s127_s11 = smov [#allocation5]  }
   0x3   :  { %s16_s10 = sshll.u32 %s126_s9, 4  ;;  %s26_s12 = sshll.u32 %s127_s11, 4  ;;  %s17_s10 = int_to_ptr.vmem [resolvable:$true] %s16_s10  ;;  %s27_s12 = int_to_ptr.vmem [resolvable:$true] %s26_s12 }
   0x4   :  { %s68_s13 = scalar_lea.vmem %s17_s10, 128  ;;  %p73_p1 = scmp.lt.s32.totalorder %s17_s10, %s17_s10 }
   0x5   :  { %p69_p0 = scmp.ne.s32.totalorder %s17_s10, %s68_s13  ;;  %p74_p2 = scmp.lt.s32.totalorder %s68_s13, %s68_s13 }
   0x7   :  { %p75_p3 = por %p74_p2, %p73_p1 }
   0x9   :  { %p76_p4 = pnand %p75_p3, %p69_p0 }
   0xb   :  { %79 = shalt.err (!%p76_p4)
}
   0xc   :  { %19 = dma.hbm_to_vmem [thread:$0]  %s153_s0, 128, %s17_s10, [#allocation3]  }
   0xd   :  { %s88_s16 = scalar_lea.vmem %s27_s12, 128  ;;  %p93_p6 = scmp.lt.s32.totalorder %s27_s12, %s27_s12 }
   0xe   :  { %p89_p5 = scmp.ne.s32.totalorder %s27_s12, %s88_s16  ;;  %p94_p7 = scmp.lt.s32.totalorder %s88_s16, %s88_s16 }
  0x10   :  { %p95_p8 = por %p94_p7, %p93_p6 }
  0x12   :  { %p96_p9 = pnand %p95_p8, %p89_p5 }
  0x14   :  { %99 = shalt.err (!%p96_p9)
}
  0x15   :  { %29 = dma.hbm_to_vmem [thread:$0]  %s154_s1, 128, %s27_s12, [#allocation6]  }
  0x16   :  { %120 = dma.done.wait [#allocation3], 128  }
  0x17   :  { %121 = vsyncadd [#allocation3], 4294967168 }
  0x18   :  { %122 = dma.done.wait [#allocation6], 128  }
  0x19   :  { %123 = vsyncadd [#allocation6], 4294967168  ;;  %s128_s19 = smov [#allocation7]   ;;  %v36_v0 = vld [vmem:[#allocation2] sm:$0xff]  ;;  %v37_v1 = vld [vmem:[#allocation5] sm:$0xff]  ;;  %vm39_vm0 = vcmask 523264  }
  0x1a   :  { %s47_s20 = sshll.u32 %s128_s19, 4  ;;  %v38_v2 = vadd.f32 %v37_v1, %v36_v0  ;;  %s48_s20 = int_to_ptr.vmem [resolvable:$true] %s47_s20 }
  0x1b   :  { %s100_s0 = scalar_lea.vmem %s48_s20, 128  ;;  %p105_p11 = scmp.lt.s32.totalorder %s48_s20, %s48_s20 }
  0x1c   :  { %40 = vst.msk [vmem:[#allocation7] sm:$0xff] %vm39_vm0, %v38_v2  ;;  %p101_p10 = scmp.ne.s32.totalorder %s48_s20, %s100_s0  ;;  %p106_p12 = scmp.lt.s32.totalorder %s100_s0, %s100_s0 }
  0x1e   :  { %p107_p13 = por %p106_p12, %p105_p11 }
  0x20   :  { %p108_p0 = pnand %p107_p13, %p101_p10 }
  0x22   :  { %111 = shalt.err (!%p108_p0)
}
  0x23   :  { %50 = dma.vmem_to_hbm [thread:$0]  %s48_s20, 128, %s155_s2, [#allocation4]  }
  0x24   :  { %124 = dma.done.wait [#allocation4], 128  }
  0x25   :  { %125 = vsyncadd [#allocation4], 4294967168 }
  0x26   :  { %54 = vsyncpa [#allocation3], 1 }
  0x27   :  { %55 = vsyncpa [#allocation6], 1 }
  0x28   :  { %56 = vsyncpa [#allocation4], 1 }

</bundles_post_ra>
